<compile_context>
chip_gen: v7x
topology: tpu7x:2x2x1
jax: 0.10.0
libtpu: 0.0.40
codegen_flags: <defaults>
</compile_context>

<pallas_src>
import functools
import math

import jax
import jax.numpy as jnp
from jax.experimental import pallas as pl
from jax.experimental.pallas import tpu as pltpu


def _cdiv(a: int, b: int) -> int:
    return -(-a // b)


def _round_up(x: int, m: int) -> int:
    return ((x + m - 1) // m) * m


# --------------------------------------------------------------------------
# Kernel 1: lane-dense flat layout (used for dim < 256 and as a general path)
#
# Output viewed as (rows, W) with W % dim == 0.  Flat element f = r*W + j maps
# to position pos = f // dim and lane-local freq index k = (f % dim) % half.
# Since W % dim == 0:  pos = r * (W // dim) + (j // dim), and k depends only on
# j, so we pass two tiny (1, W) tables: lane_chunk[j] = j // dim (int32) and
# inv_pat[j] = inv_freq[(j % dim) % half] (f32, also encodes the cat(freqs,
# freqs) duplication — no gather inside the kernel).
# --------------------------------------------------------------------------
def _rope_flat_kernel(inv_pat_ref, lane_chunk_ref, cos_ref, sin_ref, *,
                      chunks_per_row: int):
    tile_r, w = cos_ref.shape
    row0 = pl.program_id(0) * tile_r
    rows = jax.lax.broadcasted_iota(jnp.int32, (tile_r, w), 0) + row0
    # Exact integer positions, single cast to f32 (same rounding as torch).
    pos = rows * chunks_per_row + lane_chunk_ref[...]            # (tile_r, w) i32
    angles = pos.astype(jnp.float32) * inv_pat_ref[...]          # (tile_r, w) f32
    cos_ref[...] = jnp.cos(angles).astype(cos_ref.dtype)
    sin_ref[...] = jnp.sin(angles).astype(sin_ref.dtype)


# --------------------------------------------------------------------------
# Kernel 2: unique-half path (dim % 256 == 0 => half % 128 == 0).
# cos/sin computed on the unique (tile_s, half) block only, stored twice with
# lane-dense slice stores.
# --------------------------------------------------------------------------
def _rope_half_kernel(inv_freq_ref, cos_ref, sin_ref):
    tile_s, dim = cos_ref.shape
    half = dim // 2
    s0 = pl.program_id(0) * tile_s
    pos = jax.lax.broadcasted_iota(jnp.int32, (tile_s, half), 0) + s0
    angles = pos.astype(jnp.float32) * inv_freq_ref[...]         # (tile_s, half)
    c = jnp.cos(angles).astype(cos_ref.dtype)
    s = jnp.sin(angles).astype(sin_ref.dtype)
    cos_ref[:, :half] = c
    cos_ref[:, half:] = c
    sin_ref[:, :half] = s
    sin_ref[:, half:] = s


def _pick_tile_rows(rows: int, row_bytes: int, target_block_bytes: int = 1 << 20):
    """Largest row tile <= ~target bytes, multiple of 8, with >=2 grid steps
    whenever there is enough work for them."""
    cap = max(8, target_block_bytes // row_bytes)
    if rows <= 8:
        return rows                       # single tiny block == full array
    tile = min(cap, _round_up(_cdiv(rows, 2), 8))
    tile = max(8, (tile // 8) * 8)
    return tile


def llama_rotary_embedding(dim: int, seq_len: int, base: int = 10000,
                           dtype=jnp.float32):
    """Returns (cos, sin), each of shape (1, 1, seq_len, dim), dtype `dtype`."""
    assert dim % 2 == 0, "RoPE dim must be even"
    half = dim // 2

    # Deterministic "buffer" construction, same as the torch __init__.
    inv_freq = 1.0 / (base ** (jnp.arange(0, dim, 2, dtype=jnp.float32) / dim))

    compiler_params = pltpu.CompilerParams(dimension_semantics=("parallel",))

    # ---------------- Path A: unique-half compute (dim % 256 == 0) ----------
    if half % 128 == 0:
        tile_s = _pick_tile_rows(seq_len, dim * 4)
        grid = (_cdiv(seq_len, tile_s),)
        cos2d, sin2d = pl.pallas_call(
            _rope_half_kernel,
            out_shape=(jax.ShapeDtypeStruct((seq_len, dim), dtype),
                       jax.ShapeDtypeStruct((seq_len, dim), dtype)),
            grid_spec=pltpu.PrefetchScalarGridSpec(
                num_scalar_prefetch=0,
                grid=grid,
                in_specs=[pl.BlockSpec((1, half), lambda i: (0, 0))],
                out_specs=[pl.BlockSpec((tile_s, dim), lambda i: (i, 0)),
                           pl.BlockSpec((tile_s, dim), lambda i: (i, 0))],
            ),
            compiler_params=compiler_params,
        )(inv_freq.reshape(1, half))
        return cos2d[None, None, :, :], sin2d[None, None, :, :]

    # ---------------- Path B: lane-dense flat layout -------------------------
    total = seq_len * dim
    base_w = dim * (128 // math.gcd(dim, 128))        # lcm(dim, 128)
    if total % base_w == 0:
        w = base_w
        while w * 2 <= 512 and total % (w * 2) == 0:   # widen toward 512 lanes
            w *= 2
    else:
        # Fallback for awkward seq_len: natural row width (always valid).
        w = dim
    chunks_per_row = w // dim
    rows = total // w

    # Tiny per-lane tables (computed once in plain JAX, loaded once per step).
    j = jnp.arange(w, dtype=jnp.int32)
    lane_chunk = (j // dim).reshape(1, w)                                  # i32
    inv_pat = inv_freq[(j % dim) % half].reshape(1, w)                     # f32

    tile_r = _pick_tile_rows(rows, w * 4)
    grid = (_cdiv(rows, tile_r),)

    kernel = functools.partial(_rope_flat_kernel, chunks_per_row=chunks_per_row)
    cos_f, sin_f = pl.pallas_call(
        kernel,
        out_shape=(jax.ShapeDtypeStruct((rows, w), dtype),
                   jax.ShapeDtypeStruct((rows, w), dtype)),
        grid_spec=pltpu.PrefetchScalarGridSpec(
            num_scalar_prefetch=0,
            grid=grid,
            in_specs=[pl.BlockSpec((1, w), lambda i: (0, 0)),
                      pl.BlockSpec((1, w), lambda i: (0, 0))],
            out_specs=[pl.BlockSpec((tile_r, w), lambda i: (i, 0)),
                       pl.BlockSpec((tile_r, w), lambda i: (i, 0))],
        ),
        compiler_params=compiler_params,
    )(inv_pat, lane_chunk)

    # Free contiguous reshape back to the torch output layout.
    cos2d = cos_f.reshape(seq_len, dim)
    sin2d = sin_f.reshape(seq_len, dim)
    return cos2d[None, None, :, :], sin2d[None, None, :, :]


def _reference(dim, seq_len, base=10000):
    inv_freq = 1.0 / (float(base) ** (jnp.arange(0, dim, 2, dtype=jnp.float32) / dim))
    t = jnp.arange(seq_len, dtype=jnp.float32)
    freqs = jnp.einsum("i,j->ij", t, inv_freq)
    emb = jnp.concatenate([freqs, freqs], axis=-1)
    return jnp.cos(emb)[None, None, :, :], jnp.sin(emb)[None, None, :, :]


if __name__ == "__main__":
    # Small shapes consistent with the module: head dim=32, seq=8.
    dim = 32
    seq_len = 8
    batch, heads = 2, 4

    # x only supplies device/dtype in the torch module; built to mirror forward.
    key = jax.random.PRNGKey(0)
    x = jax.random.normal(key, (batch, heads, seq_len, dim), dtype=jnp.float32)

    cos, sin = llama_rotary_embedding(dim, seq_len)
    cos, sin = jax.block_until_ready((cos, sin))

    cos_ref, sin_ref = _reference(dim, seq_len)
    assert cos.shape == (1, 1, seq_len, dim) and sin.shape == (1, 1, seq_len, dim)
    assert cos.dtype == jnp.float32 and sin.dtype == jnp.float32
    assert jnp.allclose(cos, cos_ref, atol=1e-5, rtol=1e-5)
    assert jnp.allclose(sin, sin_ref, atol=1e-5, rtol=1e-5)

    # Extra sanity checks exercising the other tilings/code paths
    # (multi-block lane-dense flat path, and the unique-half path).
    for d2, s2 in [(64, 128), (256, 16)]:
        c_k, s_k = llama_rotary_embedding(d2, s2)
        c_r, s_r = _reference(d2, s2)
        assert jnp.allclose(c_k, c_r, atol=1e-5, rtol=1e-5)
        assert jnp.allclose(s_k, s_r, atol=1e-5, rtol=1e-5)

    print("KERNEL_OK")
</pallas_src>

<mosaic_0001>
module attributes {stable_mosaic.version = 11 : i64} {
  func.func @_rope_flat_kernel(%arg0: i32, %arg1: memref<1x256xf32, #tpu.memory_space<vmem>>, %arg2: memref<1x256xi32, #tpu.memory_space<vmem>>, %arg3: memref<1x256xf32, #tpu.memory_space<vmem>>, %arg4: memref<1x256xf32, #tpu.memory_space<vmem>>) attributes {dimension_semantics = [#tpu.dimension_semantics<parallel>], iteration_bounds = array<i64: 1>, scalar_prefetch = 0 : i64, scratch_operands = 0 : i64, tpu.core_type = #tpu.core_type<tc>, window_params = [{pipeline_mode = #tpu.pipeline_mode<synchronous>, transform_indices = @transform_0, window_bounds = array<i64: 1, 256>}, {pipeline_mode = #tpu.pipeline_mode<synchronous>, transform_indices = @transform_1, window_bounds = array<i64: 1, 256>}, {transform_indices = @transform_2, window_bounds = array<i64: 1, 256>}, {transform_indices = @transform_3, window_bounds = array<i64: 1, 256>}]} {
    %c1_i32 = arith.constant 1 : i32
    %0 = arith.muli %arg0, %c1_i32 : i32
    %1 = tpu.iota {dimensions = array<i32: 0>} : vector<1x256xi32>
    %2 = vector.broadcast %0 : i32 to vector<1x256xi32>
    %3 = arith.addi %1, %2 : vector<1x256xi32>
    %c8_i32 = arith.constant 8 : i32
    %4 = vector.broadcast %c8_i32 : i32 to vector<1x256xi32>
    %5 = arith.muli %3, %4 : vector<1x256xi32>
    %c0 = arith.constant 0 : index
    %c0_0 = arith.constant 0 : index
    %6 = vector.load %arg2[%c0, %c0_0] : memref<1x256xi32, #tpu.memory_space<vmem>>, vector<1x256xi32>
    %7 = arith.addi %5, %6 : vector<1x256xi32>
    %8 = arith.sitofp %7 : vector<1x256xi32> to vector<1x256xf32>
    %c0_1 = arith.constant 0 : index
    %c0_2 = arith.constant 0 : index
    %9 = vector.load %arg1[%c0_1, %c0_2] : memref<1x256xf32, #tpu.memory_space<vmem>>, vector<1x256xf32>
    %10 = arith.mulf %8, %9 : vector<1x256xf32>
    %11 = math.cos %10 : vector<1x256xf32>
    %c0_3 = arith.constant 0 : index
    %c0_4 = arith.constant 0 : index
    %12 = vector.load %arg3[%c0_3, %c0_4] : memref<1x256xf32, #tpu.memory_space<vmem>>, vector<1x256xf32>
    tpu.vector_store %arg3[%c0_3, %c0_4], %11 {strides = array<i32>} : memref<1x256xf32, #tpu.memory_space<vmem>>, vector<1x256xf32>,
    %13 = math.sin %10 : vector<1x256xf32>
    %c0_5 = arith.constant 0 : index
    %c0_6 = arith.constant 0 : index
    %14 = vector.load %arg4[%c0_5, %c0_6] : memref<1x256xf32, #tpu.memory_space<vmem>>, vector<1x256xf32>
    tpu.vector_store %arg4[%c0_5, %c0_6], %13 {strides = array<i32>} : memref<1x256xf32, #tpu.memory_space<vmem>>, vector<1x256xf32>,
    return
  }
  func.func @transform_0(%arg0: i32) -> (i32, i32) {
    %c0_i32 = arith.constant 0 : i32
    %c0_i32_0 = arith.constant 0 : i32
    %c0_i32_1 = arith.constant 0 : i32
    return %c0_i32, %c0_i32_0 : i32, i32
  }
  func.func @transform_1(%arg0: i32) -> (i32, i32) {
    %c0_i32 = arith.constant 0 : i32
    %c0_i32_0 = arith.constant 0 : i32
    %c0_i32_1 = arith.constant 0 : i32
    return %c0_i32, %c0_i32_0 : i32, i32
  }
  func.func @transform_2(%arg0: i32) -> (i32, i32) {
    %c0_i32 = arith.constant 0 : i32
    %c0_i32_0 = arith.constant 0 : i32
    return %arg0, %c0_i32 : i32, i32
  }
  func.func @transform_3(%arg0: i32) -> (i32, i32) {
    %c0_i32 = arith.constant 0 : i32
    %c0_i32_0 = arith.constant 0 : i32
    return %arg0, %c0_i32 : i32, i32
  }
}

</mosaic_0001>

<bundles_post_ra>
// kernel: tpu_custom_call.1
= control target key start
LH: loop header
LB: loop body
LE: loop exit
PB: predicated region body
PF: predicated region fallthrough
CT: control target
= control target key end

     0   :  { %9 = vsyncpa [#allocation3], 0  ;;  %s809_s0 = inlined_call_operand.hbm [shape: f32[1,256], index: 0, kind: input, shape index: {}]   ;;  %s810_s1 = inlined_call_operand.vmem [shape: s32[1,256], index: 1, kind: input, shape index: {}]   ;;  %s811_s2 = inlined_call_operand.hbm [shape: f32[1,256], index: 2, kind: output, shape index: {0}]   ;;  %s812_s3 = inlined_call_operand.hbm [shape: f32[1,256], index: 3, kind: output, shape index: {1}]  }
   0x1   :  { %10 = vsyncpa [#allocation4], 0 }
   0x2   :  { %11 = vsyncpa [#allocation7], 0  ;;  %s658_s12 = smov [#allocation2]   ;;  %s586_s16 = scalar_lea.hbm %s809_s0, 32 }
   0x3   :  { %s18_s13 = sshll.u32 %s658_s12, 4  ;;  %p587_p0 = scmp.ne.s32.totalorder %s809_s0, %s586_s16  ;;  %s19_s13 = int_to_ptr.vmem [resolvable:$true] %s18_s13 }
   0x4   :  { %p590_p1 = scmp.lt.u32.totalorder %s586_s16, %s809_s0 }
   0x6   :  { %p592_p2 = pnand %p590_p1, %p587_p0 }
   0x8   :  { %595 = shalt.err (!%p592_p2)
}
   0x9   :  { %s596_s21 = scalar_lea.vmem %s19_s13, 32  ;;  %p601_p4 = scmp.lt.s32.totalorder %s19_s13, %s19_s13 }
   0xa   :  { %p597_p3 = scmp.ne.s32.totalorder %s19_s13, %s596_s21  ;;  %p602_p5 = scmp.lt.s32.totalorder %s596_s21, %s596_s21 }
   0xc   :  { %p603_p6 = por %p602_p5, %p601_p4 }
   0xe   :  { %p604_p7 = pnand %p603_p6, %p597_p3 }
  0x10   :  { %607 = shalt.err (!%p604_p7)
}
  0x11   :  { %21 = dma.hbm_to_vmem [thread:$0]  %s809_s0, 32, %s19_s13, [#allocation3]  }
  0x12   :  { %652 = dma.done.wait [#allocation3], 32  }
  0x13   :  { %653 = vsyncadd [#allocation3], 4294967264  ;;  %v27_v0 = vlaneseq  ;;  %v32_v5 = vld [vmem:[%s810_s1] sm:$0x3]  ;;  %v659_v39 = vmov 683565275  }
  0x14   :  { %v45_v6 = vld [vmem:[#allocation2] sm:$0x3]  ;;  %v660_v41 = vmov 2475754826   ;;  %v661_v43 = vmov 2131351028  }
  0x15   :  { %v701_v1 = vshrl.u32 %v27_v0, 7  ;;  %v662_v45 = vmov 2102212464   ;;  %v663_v47 = vmov 920167782   ;;  %s666_s0 = smov [#allocation5]  }
  0x16   :  { %v664_v55 = vmov 1326507024   ;;  %s521_s1 = sshll.u32 %s666_s0, 4  ;;  %s667_s26 = smov [#allocation6]   ;;  %s522_s1 = int_to_ptr.vmem [resolvable:$true] %s521_s1 }
  0x17   :  { %v35_v2 = vsub.s32 0, %v701_v1  ;;  %v39_v3 = vsub.s32 1, %v701_v1  ;;  %v31_v4 = vmul.u32 8, %v701_v1  ;;  %s531_s27 = sshll.u32 %s667_s26, 4  ;;  %s608_s28 = scalar_lea.vmem %s522_s1, 32  ;;  %s532_s27 = int_to_ptr.vmem [resolvable:$true] %s531_s27 }
  0x18   :  { %p609_p8 = scmp.ne.s32.totalorder %s522_s1, %s608_s28  ;;  %p613_p9 = scmp.lt.s32.totalorder %s522_s1, %s522_s1 }
  0x19   :  { %v36_v7 = vrot.slane %v32_v5, %v35_v2  ;;  %v40_v8 = vrot.slane %v32_v5, %v39_v3  ;;  %v50_v11 = vrot.slane %v45_v6, %v35_v2  ;;  %v54_v12 = vrot.slane %v45_v6, %v39_v3  ;;  %p614_p10 = scmp.lt.s32.totalorder %s608_s28, %s608_s28 }
  0x1b   :  { %v41_v9 = vadd.s32 %v36_v7, %v31_v4  ;;  %v42_v10 = vadd.s32 %v40_v8, %v31_v4  ;;  %p615_p11 = por %p614_p10, %p613_p9 }
  0x1d   :  { %v43_v13 = vcvt.s32.f32 %v41_v9  ;;  %v44_v14 = vcvt.s32.f32 %v42_v10  ;;  %p616_p12 = pnand %p615_p11, %p609_p8 }
  0x1f   :  { %v709_v15 = vmul.f32 %v50_v11, %v43_v13  ;;  %v711_v16 = vmul.f32 %v54_v12, %v44_v14 }
  0x21   :  { %v59_v17 = vand.u32 2147483647, %v709_v15  ;;  %v62_v18 = vand.u32 2139095040, %v709_v15  ;;  %v162_v19 = vand.u32 2147483647, %v711_v16  ;;  %v165_v20 = vand.u32 2139095040, %v711_v16 }
  0x22   :  { %vm61_vm14 = vcmp.lt.s32.totalorder %v709_v15, 0 }
  0x23   :  { %v63_v21 = vshrl.u32 %v62_v18, 23  ;;  %v66_v22 = vand.u32 8388607, %v59_v17  ;;  %v166_v23 = vshrl.u32 %v165_v20, 23  ;;  %v169_v24 = vand.u32 8388607, %v162_v19 }
  0x24   :  { %vm60_vm15 = vcmp.le.f32.partialorder %v59_v17, 0.7853982 }
  0x25   :  { %v544_v25 = vadd.s32 4294967169, %v63_v21  ;;  %v548_v26 = vadd.s32 4294967169, %v166_v23  ;;  %v67_v28 = vor.u32 8388608, %v66_v22  ;;  %v170_v29 = vor.u32 8388608, %v169_v24 }
  0x27   :  { %v69_v27 = vadd.s32 1, %v544_v25  ;;  %v172_v30 = vadd.s32 1, %v548_v26  ;;  %v721_v35 = vshll.u32 %v67_v28, 8  ;;  %v723_v37 = vshll.u32 %v170_v29, 8 }
  0x29   :  { %vm70_vm0 = vcmp.gt.s32.totalorder %v69_v27, 0  ;;  %vm173_vm1 = vcmp.gt.s32.totalorder %v172_v30, 0 }
  0x2a   :  { %v71_v31 = vsel %vm70_vm0, %v69_v27, 0  ;;  %v174_v34 = vsel %vm173_vm1, %v172_v30, 0  ;;  %vm164_vm0 = vcmp.lt.s32.totalorder %v711_v16, 0  ;;  %vm163_vm1 = vcmp.le.f32.partialorder %v162_v19, 0.7853982 }
  0x2b   :  { %v72_v32 = vshrl.u32 %v71_v31, 5  ;;  %v73_v33 = vand.u32 31, %v71_v31  ;;  %v176_v36 = vand.u32 31, %v174_v34  ;;  %v725_v49 = vshrl.u32 %v174_v34, 5 }
  0x2d   :  { %v74_v38 = vsub.s32 32, %v73_v33  ;;  %v76_v40 = vshll.u32 %v659_v39, %v73_v33  ;;  %v79_v42 = vshll.u32 %v660_v41, %v73_v33  ;;  %v82_v44 = vshll.u32 %v661_v43, %v73_v33 }
  0x2e   :  { %v85_v46 = vshll.u32 %v662_v45, %v73_v33  ;;  %v88_v48 = vshll.u32 %v663_v47, %v73_v33  ;;  %vm91_vm2 = vcmp.lt.s32.totalorder %v72_v32, 1  ;;  %vm92_vm3 = vcmp.lt.s32.totalorder %v72_v32, 2 }
  0x2f   :  { %v75_v50 = vshrl.u32 %v659_v39, %v74_v38  ;;  %v77_v51 = vshrl.u32 %v660_v41, %v74_v38  ;;  %v80_v52 = vshrl.u32 %v661_v43, %v74_v38  ;;  %v83_v53 = vshrl.u32 %v662_v45, %v74_v38 }
  0x30   :  { %v86_v54 = vshrl.u32 %v663_v47, %v74_v38  ;;  %v89_v56 = vshrl.u32 %v664_v55, %v74_v38  ;;  %vm94_vm4 = vcmp.lt.s32.totalorder %v72_v32, 4  ;;  %v177_v60 = vsub.s32 32, %v176_v36 }
  0x31   :  { %v78_v57 = vor.u32 %v77_v51, %v76_v40  ;;  %v81_v58 = vor.u32 %v80_v52, %v79_v42  ;;  %v84_v59 = vor.u32 %v83_v53, %v82_v44  ;;  %vm93_vm5 = vcmp.lt.s32.totalorder %v72_v32, 3 }
  0x32   :  { %v87_v61 = vor.u32 %v86_v54, %v85_v46  ;;  %v90_v62 = vor.u32 %v89_v56, %v88_v48  ;;  %v179_v63 = vshll.u32 %v659_v39, %v176_v36  ;;  %v182_v9 = vshll.u32 %v660_v41, %v176_v36 }
  0x33   :  { %v95_v2 = vsel %vm91_vm2, %v75_v50, %v78_v57  ;;  %v96_v3 = vsel %vm94_vm4, %v84_v59, 2102212464  ;;  %v99_v4 = vsel %vm91_vm2, %v78_v57, %v81_v58  ;;  %v103_v5 = vsel %vm91_vm2, %v81_v58, %v84_v59 }
  0x34   :  { %v97_v6 = vsel %vm93_vm5, %v81_v58, %v96_v3  ;;  %v100_v7 = vsel %vm94_vm4, %v87_v61, 920167782  ;;  %v104_v8 = vsel %vm94_vm4, %v90_v62, 1326507024  ;;  %v178_v12 = vshrl.u32 %v659_v39, %v177_v60 }
  0x35   :  { %v101_v10 = vsel %vm93_vm5, %v84_v59, %v100_v7  ;;  %v105_v11 = vsel %vm93_vm5, %v87_v61, %v104_v8  ;;  %v180_v13 = vshrl.u32 %v660_v41, %v177_v60  ;;  %v98_v14 = vsel %vm92_vm3, %v95_v2, %v97_v6 }
  0x36   :  { %v102_v18 = vsel %vm92_vm3, %v99_v4, %v101_v10  ;;  %v106_v20 = vsel %vm92_vm3, %v103_v5, %v105_v11  ;;  %v183_v21 = vshrl.u32 %v661_v43, %v177_v60  ;;  %v185_v28 = vshll.u32 %v661_v43, %v176_v36 }
  0x37   :  { %v734_v22 = vmul.u32.u64.low %v721_v35, %v106_v20  ;;  %v735_v23 = vmul.u32.u64.high %v721_v35, %v106_v20, %v734_v22  ;;  %v738_v24 = vmul.u32.u64.low %v721_v35, %v102_v18  ;;  %v739_v25 = vmul.u32.u64.high %v721_v35, %v102_v18, %v738_v24 }
  0x38   :  { %v181_v26 = vor.u32 %v180_v13, %v179_v63  ;;  %v184_v27 = vor.u32 %v183_v21, %v182_v9  ;;  %v186_v29 = vshrl.u32 %v662_v45, %v177_v60  ;;  %v188_v30 = vshll.u32 %v662_v45, %v176_v36 }
  0x39   :  { %v189_v31 = vshrl.u32 %v663_v47, %v177_v60  ;;  %v191_v33 = vshll.u32 %v663_v47, %v176_v36  ;;  %v192_v34 = vshrl.u32 %v664_v55, %v177_v60  ;;  %v114_v32 = vmul.u32 %v721_v35, %v98_v14 }
  0x3a   :  { %v187_v38 = vor.u32 %v186_v29, %v185_v28  ;;  %vm194_vm6 = vcmp.lt.s32.totalorder %v725_v49, 1  ;;  %vm195_vm7 = vcmp.lt.s32.totalorder %v725_v49, 2  ;;  %vm116_vm8 = vc.u32 %v735_v23, %v738_v24 }
  0x3b   :  { %v117_v39 = vadd.s32 1, %v739_v25  ;;  %v190_v40 = vor.u32 %v189_v31, %v188_v30  ;;  %vm196_vm9 = vcmp.lt.s32.totalorder %v725_v49, 3  ;;  %v193_v41 = vor.u32 %v192_v34, %v191_v33 }
  0x3c   :  { %vm197_vm10 = vcmp.lt.s32.totalorder %v725_v49, 4  ;;  %v198_v42 = vsel %vm194_vm6, %v178_v12, %v181_v26  ;;  %v202_v36 = vsel %vm194_vm6, %v181_v26, %v184_v27  ;;  %v206_v45 = vsel %vm194_vm6, %v184_v27, %v187_v38 }
  0x3d   :  { %v118_v43 = vsel %vm116_vm8, %v117_v39, %v739_v25  ;;  %v199_v35 = vsel %vm197_vm10, %v187_v38, 2102212464  ;;  %v203_v44 = vsel %vm197_vm10, %v190_v40, 920167782  ;;  %v207_v50 = vsel %vm197_vm10, %v193_v41, 1326507024 }
  0x3e   :  { %v119_v46 = vadd.s32 %v118_v43, %v114_v32  ;;  %v200_v47 = vsel %vm196_vm9, %v184_v27, %v199_v35  ;;  %v204_v48 = vsel %vm196_vm9, %v187_v38, %v203_v44  ;;  %v208_v53 = vsel %vm196_vm9, %v190_v40, %v207_v50 }
  0x3f   :  { %v201_v51 = vsel %vm195_vm7, %v198_v42, %v200_v47  ;;  %v205_v52 = vsel %vm195_vm7, %v202_v36, %v204_v48  ;;  %v209_v55 = vsel %vm195_vm7, %v206_v45, %v208_v53  ;;  %v115_v12 = vadd.s32 %v738_v24, %v735_v23 }
  0x40   :  { %v120_v54 = vadd.s32 536870912, %v119_v46  ;;  %v756_v56 = vmul.u32.u64.low %v723_v37, %v205_v52  ;;  %v757_v57 = vmul.u32.u64.high %v723_v37, %v205_v52, %v756_v56  ;;  %v217_v61 = vmul.u32 %v723_v37, %v201_v51 }
  0x41   :  { %v760_v58 = vmul.u32.u64.low %v723_v37, %v209_v55  ;;  %v761_v59 = vmul.u32.u64.high %v723_v37, %v209_v55, %v760_v58  ;;  %vm151_vm8 = vweird.f32 %v709_v15 }
  0x42   :  { %v121_v60 = vshrl.u32 %v120_v54, 30  ;;  %v220_v63 = vadd.s32 1, %v757_v57 }
  0x43   :  { %vm219_vm11 = vc.u32 %v761_v59, %v756_v56  ;;  %v218_v33 = vadd.s32 %v756_v56, %v761_v59 }
  0x44   :  { %v122_v62 = vshll.u32 %v121_v60, 30  ;;  %v221_v49 = vsel %vm219_vm11, %v220_v63, %v757_v57  ;;  %v145_v36 = vsub.s32 4, %v121_v60 }
  0x45   :  { %v222_v3 = vadd.s32 %v221_v49, %v217_v61 }
  0x46   :  { %v123_v2 = vsub.s32 %v119_v46, %v122_v62  ;;  %v146_v48 = vsel %vm61_vm14, %v145_v36, %v121_v60 }
  0x47   :  { %v223_v5 = vadd.s32 536870912, %v222_v3  ;;  %v148_v52 = vsel %vm60_vm15, 0, %v146_v48 }
  0x48   :  { %v125_v4 = vsub.s32 0, %v123_v2  ;;  %v381_v55 = vadd.s32 3, %v148_v52  ;;  %v152_v60 = vand.u32 3, %v148_v52 }
  0x49   :  { %v224_v7 = vshrl.u32 %v223_v5, 30 }
  0x4a   :  { %v545_v6 = vmin.u32 %v125_v4, %v123_v2  ;;  %v382_v61 = vand.u32 3, %v381_v55  ;;  %vm154_vm2 = vcmp.eq.s32.totalorder %v152_v60, 0  ;;  %vm157_vm3 = vcmp.eq.s32.totalorder %v152_v60, 2 }
  0x4b   :  { %v225_v9 = vshll.u32 %v224_v7, 30  ;;  %v248_v51 = vsub.s32 4, %v224_v7  ;;  %vm153_vm6 = vcmp.lt.s32.totalorder %v152_v60, 2 }
  0x4c   :  { %v127_v8 = vclz %v545_v6  ;;  %vm384_vm4 = vcmp.eq.s32.totalorder %v382_v61, 0  ;;  %vm387_vm5 = vcmp.eq.s32.totalorder %v382_v61, 2  ;;  %vm383_vm7 = vcmp.lt.s32.totalorder %v382_v61, 2 }
  0x4d   :  { %v226_v11 = vsub.s32 %v222_v3, %v225_v9  ;;  %v249_v54 = vsel %vm164_vm0, %v248_v51, %v224_v7  ;;  %v665_v3 = vmov 1966171168  }
  0x4e   :  { %v546_v10 = vadd.s32 4294967294, %v127_v8  ;;  %v251_v58 = vsel %vm163_vm1, 0, %v249_v54  ;;  %v269_v4 = vunpack.c.l.s4 %v665_v3 }
  0x4f   :  { %v228_v13 = vsub.s32 0, %v226_v11  ;;  %v485_v63 = vadd.s32 3, %v251_v58  ;;  %v255_v19 = vand.u32 3, %v251_v58 }
  0x50   :  { %vm547_vm12 = vcmp.lt.s32.totalorder %v546_v10, 0 }
  0x51   :  { %v130_v37 = vsel %vm547_vm12, 0, %v546_v10  ;;  %v549_v21 = vmin.u32 %v228_v13, %v226_v11  ;;  %v486_v5 = vand.u32 3, %v485_v63  ;;  %v270_v10 = vunpack.c.0.s8 %v269_v4 }
  0x52   :  { %v131_v14 = vsub.s32 32, %v130_v37  ;;  %v132_v18 = vshll.u32 %v123_v2, %v130_v37  ;;  %v135_v20 = vsub.s32 4294967266, %v130_v37  ;;  %vm257_vm9 = vcmp.eq.s32.totalorder %v255_v19, 0 }
  0x53   :  { %v230_v26 = vclz %v549_v21  ;;  %vm260_vm10 = vcmp.eq.s32.totalorder %v255_v19, 2  ;;  %vm491_vm11 = vcmp.eq.s32.totalorder %v486_v5, 2  ;;  %vm488_vm12 = vcmp.eq.s32.totalorder %v486_v5, 0 }
  0x54   :  { %v133_v22 = vshrl.u32 %v115_v12, %v131_v14  ;;  %v136_v25 = vadd.s32 127, %v135_v20 }
  0x55   :  { %v550_v29 = vadd.s32 4294967294, %v230_v26 }
  0x56   :  { %v134_v27 = vor.u32 %v133_v22, %v132_v18  ;;  %v137_v28 = vshll.u32 %v136_v25, 23 }
  0x57   :  { %vm551_vm13 = vcmp.lt.s32.totalorder %v550_v29, 0 }
  0x58   :  { %v138_v30 = vor.u32 4788187, %v137_v28  ;;  %v141_v31 = vcvt.s32.f32 %v134_v27  ;;  %v233_v23 = vsel %vm551_vm13, 0, %v550_v29  ;;  %vm256_vm13 = vcmp.lt.s32.totalorder %v255_v19, 2 }
  0x59   :  { %v234_v24 = vsub.s32 32, %v233_v23  ;;  %v235_v32 = vshll.u32 %v226_v11, %v233_v23  ;;  %v238_v38 = vsub.s32 4294967266, %v233_v23  ;;  %v273_v29 = vsub.s32 %v270_v10, %v701_v1 }
  0x5a   :  { %v139_v34 = vand.u32 2147483647, %v138_v30 }
  0x5b   :  { %v236_v40 = vshrl.u32 %v218_v33, %v234_v24  ;;  %v239_v41 = vadd.s32 127, %v238_v38 }
  0x5c   :  { %v142_v39 = vmul.f32 %v141_v31, %v139_v34 }
  0x5d   :  { %v237_v43 = vor.u32 %v236_v40, %v235_v32  ;;  %v240_v35 = vshll.u32 %v239_v41, 23 }
  0x5e   :  { %v143_v42 = vxor.u32 2147483648, %v142_v39 }
  0x5f   :  { %v241_v46 = vor.u32 4788187, %v240_v35  ;;  %v244_v47 = vcvt.s32.f32 %v237_v43 }
  0x60   :  { %v144_v44 = vsel %vm61_vm14, %v143_v42, %v142_v39  ;;  %vm487_vm14 = vcmp.lt.s32.totalorder %v486_v5, 2 }
  0x61   :  { %v147_v45 = vsel %vm60_vm15, %v709_v15, %v144_v44  ;;  %v242_v50 = vand.u32 2147483647, %v241_v46  ;;  %vm254_vm15 = vweird.f32 %v711_v16 }
  0x62   :  { %578 = vcosq.f32 %v147_v45 }
  0x63   :  { %580 = vsinq.f32 %v147_v45  ;;  %v245_v53 = vmul.f32 %v244_v47, %v242_v50 }
  0x65   :  { %v246_v17 = vxor.u32 2147483648, %v245_v53 }
  0x67   :  { %v247_v56 = vsel %vm164_vm0, %v246_v17, %v245_v53  ;;  %vm285_vm0 = vcmp.lt.s32.totalorder %v27_v0, 256 }
  0x68   :  { %v250_v57 = vsel %vm163_vm1, %v711_v16, %v247_v56 }
  0x69   :  { %582 = vcosq.f32 %v250_v57 }
  0x6a   :  { %584 = vsinq.f32 %v250_v57 }
  0x6c   :  { %v579_v59 = vpop.eup %578 }
  0x6d   :  { %v581_v62 = vpop.eup %580  ;;  %v158_v49 = vxor.u32 2147483648, %v579_v59 }
  0x6e   :  { %v155_v2 = vxor.u32 2147483648, %v581_v62 }
  0x6f   :  { %v159_v7 = vsel %vm157_vm3, %v158_v49, %v581_v62  ;;  %v389_v9 = vsel %vm387_vm5, %v158_v49, %v581_v62 }
  0x70   :  { %v156_v6 = vsel %vm154_vm2, %v579_v59, %v155_v2  ;;  %v386_v8 = vsel %vm384_vm4, %v579_v59, %v155_v2 }
  0x71   :  { %v160_v37 = vsel %vm153_vm6, %v156_v6, %v159_v7  ;;  %v390_v14 = vsel %vm383_vm7, %v386_v8, %v389_v9 }
  0x72   :  { %v161_v22 = vsel %vm151_vm8, nan, %v160_v37  ;;  %v391_v26 = vsel %vm151_vm8, nan, %v390_v14 }
  0x73   :  { %v583_v11 = vpop.eup %582 }
  0x74   :  { %v585_v12 = vpop.eup %584  ;;  %v261_v13 = vxor.u32 2147483648, %v583_v11 }
  0x75   :  { %v258_v18 = vxor.u32 2147483648, %v585_v12 }
  0x76   :  { %v262_v20 = vsel %vm260_vm10, %v261_v13, %v585_v12  ;;  %v493_v21 = vsel %vm491_vm11, %v261_v13, %v585_v12 }
  0x77   :  { %v259_v25 = vsel %vm257_vm9, %v583_v11, %v258_v18  ;;  %v490_v27 = vsel %vm488_vm12, %v583_v11, %v258_v18 }
  0x78   :  { %v263_v28 = vsel %vm256_vm13, %v259_v25, %v262_v20  ;;  %v494_v30 = vsel %vm487_vm14, %v490_v27, %v493_v21 }
  0x79   :  { %v264_v31 = vsel %vm254_vm15, nan, %v263_v28  ;;  %v495_v33 = vsel %vm254_vm15, nan, %v494_v30 }
  0x7a   :  { %v267_v34 = vcombine.low %v161_v22, %v264_v31  ;;  %v498_v23 = vcombine.low %v391_v26, %v495_v33 }
  0x7c   :  { %v274_v16 = vrot.slane %v267_v34, %v273_v29  ;;  %v505_v24 = vrot.slane %v498_v23, %v273_v29 }
  0x7e   :  { %v281_v32 = vrot.slane %v274_v16, %v273_v29  ;;  %v512_v15 = vrot.slane %v505_v24, %v273_v29 }
  0x80   :  { %287 = vst.msk [vmem:[#allocation5] sm:$0x3] %vm285_vm0, %v281_v32  ;;  %514 = vst.msk [vmem:[#allocation6] sm:$0x3] %vm285_vm0, %v512_v15 }
  0x81   :  { %619 = shalt.err (!%p616_p12)
}
  0x82   :  { %s620_s4 = scalar_lea.hbm %s811_s2, 32 }
  0x83   :  { %p621_p13 = scmp.ne.s32.totalorder %s811_s2, %s620_s4  ;;  %p624_p0 = scmp.lt.u32.totalorder %s620_s4, %s811_s2 }
  0x85   :  { %p626_p1 = pnand %p624_p0, %p621_p13 }
  0x87   :  { %629 = shalt.err (!%p626_p1)
}
  0x88   :  { %524 = dma.vmem_to_hbm [thread:$0]  %s522_s1, 32, %s811_s2, [#allocation4]  }
  0x89   :  { %s630_s11 = scalar_lea.vmem %s532_s27, 32  ;;  %p635_p3 = scmp.lt.s32.totalorder %s532_s27, %s532_s27 }
  0x8a   :  { %p631_p2 = scmp.ne.s32.totalorder %s532_s27, %s630_s11  ;;  %p636_p4 = scmp.lt.s32.totalorder %s630_s11, %s630_s11 }
  0x8c   :  { %p637_p5 = por %p636_p4, %p635_p3 }
  0x8e   :  { %p638_p6 = pnand %p637_p5, %p631_p2 }
  0x90   :  { %641 = shalt.err (!%p638_p6)
}
  0x91   :  { %s642_s14 = scalar_lea.hbm %s812_s3, 32 }
  0x92   :  { %p643_p7 = scmp.ne.s32.totalorder %s812_s3, %s642_s14  ;;  %p646_p8 = scmp.lt.u32.totalorder %s642_s14, %s812_s3 }
  0x94   :  { %p648_p9 = pnand %p646_p8, %p643_p7 }
  0x96   :  { %651 = shalt.err (!%p648_p9)
}
  0x97   :  { %534 = dma.vmem_to_hbm [thread:$0]  %s532_s27, 32, %s812_s3, [#allocation7]  }
  0x98   :  { %654 = dma.done.wait [#allocation4], 32  }
  0x99   :  { %655 = vsyncadd [#allocation4], 4294967264 }
  0x9a   :  { %656 = dma.done.wait [#allocation7], 32  }
  0x9b   :  { %657 = vsyncadd [#allocation7], 4294967264 }
  0x9c   :  { %541 = vsyncpa [#allocation3], 1 }
  0x9d   :  { %542 = vsyncpa [#allocation4], 1 }
  0x9e   :  { %543 = vsyncpa [#allocation7], 1 }

</bundles_post_ra>
